<compile_context>
chip_gen: v6e
topology: v6e:2x2x1
jax: 0.10.0
libtpu: 0.0.40
codegen_flags: <defaults>
</compile_context>

<pallas_src>
import jax
import jax.numpy as jnp
from jax.experimental import pallas as pl
from jax.experimental.pallas import tpu as pltpu

_LANES = 128
_BLOCK_ROWS = 512       # ~512-row blocks: 256 KiB err + 128 KiB gt per grid step


def _round_up(x, m):
    return ((x + m - 1) // m) * m


def _lovasz_tail_kernel(num_base_ref, den_base_ref, jac_prev0_ref,
                        err_ref, gt_ref, tri_ref, out_ref):
    """Post-sort Lovasz hinge on one (br, 128) row block of the sorted data.

    Per row r (row_off = #positives before row r, row_start = flat index of col 0):
      num_base = gts - row_off
      den_base = gts + row_start + 1 - row_off
    With cs_row = within-row inclusive cumsum of gt:
      intersection = num_base - cs_row
      union        = den_base + col - cs_row      (always >= 1)
    jac_prev0[r] = jaccard of the element just before row r's first element
                   (0 for the global first element).
    """
    br, lanes = err_ref.shape

    # Within-row inclusive cumsum of gt on the MXU (bf16 0/1 operands -> exact f32).
    cs_row = jnp.dot(gt_ref[...], tri_ref[...], preferred_element_type=jnp.float32)

    col_i = jax.lax.broadcasted_iota(jnp.int32, (br, lanes), 1)
    col_f = col_i.astype(jnp.float32)

    num = num_base_ref[...] - cs_row                 # gts - cumsum(gt)       (intersection)
    den = den_base_ref[...] + col_f - cs_row         # gts + (i+1) - cumsum   (union >= 1)
    jac = 1.0 - num / den                            # single divide per element

    # jac_prev[i] = jac[i-1]: lane roll (XLU slot, ~free) for columns >= 1; the
    # precomputed per-row boundary value covers column 0.
    jac_lane = pltpu.roll(jac, shift=1, axis=1)
    jac_prev = jnp.where(col_i == 0, jac_prev0_ref[...], jac_lane)

    grad = jac - jac_prev
    contrib = jnp.maximum(err_ref[...], 0.0) * grad  # pads: relu(err)=0, grad finite -> 0

    # Partial reduce to one (8, 128) vreg slab; cross-lane/cross-block sum is outside.
    acc = contrib[0:8]
    for g in range(1, br // 8):
        acc = acc + contrib[g * 8:(g + 1) * 8]
    out_ref[0, :, :] = acc


def lovasz_hinge_loss(logits, targets):
    """LovaszHingeLoss.forward(inputs, targets) == lovasz_hinge(..., per_image=False)."""
    logits = logits.reshape(-1).astype(jnp.float32)
    labels = targets.reshape(-1).astype(jnp.float32)
    n = logits.shape[0]
    if n == 0:                                       # matches torch: logits.sum() * 0.
        return jnp.sum(logits) * 0.0

    # errors = 1 - logits*signs; descending sort carrying labels along (one fused sort).
    signs = 2.0 * labels - 1.0
    errors = 1.0 - logits * signs
    # TODO(synk): torch.sort's tie ordering may differ among exactly-tied errors;
    # irrelevant for continuous logits.
    neg_sorted, gt_sorted = jax.lax.sort_key_val(-errors, labels)
    err_sorted = -neg_sorted

    # Row-major (rows, 128) layout split into `nblocks` row blocks of `br` rows each.
    rows_raw = pl.cdiv(n, _LANES)
    nblocks = pl.cdiv(rows_raw, _BLOCK_ROWS)
    br = max(8, _round_up(pl.cdiv(rows_raw, nblocks), 8))
    rows = nblocks * br
    npad = rows * _LANES - n

    # Pads: err = -1 (relu -> 0), gt = 0, so they contribute nothing to loss or counts.
    err2d = jnp.pad(err_sorted, (0, npad), constant_values=-1.0).reshape(rows, _LANES)
    gt2d_f32 = jnp.pad(gt_sorted, (0, npad)).reshape(rows, _LANES)

    # Hoisted out of the kernel (O(rows) XLA work; counts are exact integers in f32):
    # total positives, per-row exclusive prefix counts, per-row jac_prev boundary value.
    row_sums = jnp.sum(gt2d_f32, axis=1)                    # (rows,)
    incl = jnp.cumsum(row_sums)
    row_off = incl - row_sums                               # positives before each row
    gts = incl[-1]                                          # total positives
    pos_r0 = jnp.arange(rows, dtype=jnp.float32) * _LANES   # flat index of each row's col 0
    num_base = gts - row_off
    den_base = gts + (pos_r0 + 1.0) - row_off               # + col in-kernel gives the union
    jac_prev0 = jnp.where(pos_r0 == 0.0, 0.0, 1.0 - num_base / (den_base - 1.0))

    num_base = num_base.reshape(rows, 1)
    den_base = den_base.reshape(rows, 1)
    jac_prev0 = jac_prev0.reshape(rows, 1)
    gt2d = gt2d_f32.astype(jnp.bfloat16)                    # exact 0/1; halves gt DMA

    # 128x128 upper-triangular (incl. diagonal) bf16 constant, built once and reused
    # by every grid step via an index_map pinned to (0, 0).
    li = jax.lax.broadcasted_iota(jnp.int32, (_LANES, _LANES), 0)
    lj = jax.lax.broadcasted_iota(jnp.int32, (_LANES, _LANES), 1)
    tri = (li <= lj).astype(jnp.bfloat16)

    # Fixed per-step working set (double-buffered inputs) + headroom for f32 temps;
    # constant in n, well under v7x's 64 MiB physical VMEM.
    tile_in_bytes = br * _LANES * (4 + 2) + _LANES * _LANES * 2 + 3 * br * 4
    vmem_limit = int(min(48 * 1024 * 1024, 4 * tile_in_bytes + (12 << 20)))

    grid_spec = pltpu.PrefetchScalarGridSpec(
        num_scalar_prefetch=0,
        grid=(nblocks,),
        in_specs=[
            pl.BlockSpec((br, 1), lambda b: (b, 0)),            # num_base
            pl.BlockSpec((br, 1), lambda b: (b, 0)),            # den_base
            pl.BlockSpec((br, 1), lambda b: (b, 0)),            # jac_prev0
            pl.BlockSpec((br, _LANES), lambda b: (b, 0)),       # err (f32)
            pl.BlockSpec((br, _LANES), lambda b: (b, 0)),       # gt  (bf16)
            pl.BlockSpec((_LANES, _LANES), lambda b: (0, 0)),   # tri (constant)
        ],
        out_specs=pl.BlockSpec((1, 8, _LANES), lambda b: (b, 0, 0)),
    )
    partial = pl.pallas_call(
        _lovasz_tail_kernel,
        out_shape=jax.ShapeDtypeStruct((nblocks, 8, _LANES), jnp.float32),
        grid_spec=grid_spec,
        compiler_params=pltpu.CompilerParams(
            dimension_semantics=("parallel",),
            vmem_limit_bytes=vmem_limit,
        ),
    )(num_base, den_base, jac_prev0, err2d, gt2d, tri)

    return jnp.sum(partial)


def _lovasz_hinge_ref(logits, targets):
    """Pure-JAX reference mirroring the PyTorch code (per_image=False, ignore=None)."""
    logits = logits.reshape(-1).astype(jnp.float32)
    labels = targets.reshape(-1).astype(jnp.float32)
    signs = 2.0 * labels - 1.0
    errors = 1.0 - logits * signs
    order = jnp.argsort(-errors)
    errors_sorted = errors[order]
    gt_sorted = labels[order]
    gts = gt_sorted.sum()
    intersection = gts - jnp.cumsum(gt_sorted)
    union = gts + jnp.cumsum(1.0 - gt_sorted)
    jaccard = 1.0 - intersection / union
    grad = jnp.concatenate([jaccard[:1], jaccard[1:] - jaccard[:-1]])
    return jnp.dot(jnp.maximum(errors_sorted, 0.0), grad)


if __name__ == "__main__":
    key = jax.random.PRNGKey(0)
    k_logits, k_labels, k_logits2, k_labels2 = jax.random.split(key, 4)

    # Small shape consistent with a binary-segmentation forward pass.
    B, C, H, W = 2, 1, 16, 16
    logits = jax.random.normal(k_logits, (B, C, H, W), jnp.float32)          # scores
    targets = (jax.random.uniform(k_labels, (B, C, H, W)) > 0.5).astype(jnp.float32)

    loss = jax.jit(lovasz_hinge_loss)(logits, targets)
    jax.block_until_ready(loss)
    ref = _lovasz_hinge_ref(logits, targets)
    jax.block_until_ready(ref)
    assert loss.shape == (), loss.shape
    assert bool(jnp.isfinite(loss)), loss
    assert bool(jnp.allclose(loss, ref, rtol=1e-4, atol=1e-4)), (float(loss), float(ref))

    # A second, multi-block shape to exercise the tiled grid and block boundaries.
    logits2 = jax.random.normal(k_logits2, (2, 1, 256, 160), jnp.float32)
    targets2 = (jax.random.uniform(k_labels2, (2, 1, 256, 160)) > 0.5).astype(jnp.float32)
    loss2 = jax.jit(lovasz_hinge_loss)(logits2, targets2)
    jax.block_until_ready(loss2)
    ref2 = _lovasz_hinge_ref(logits2, targets2)
    assert bool(jnp.allclose(loss2, ref2, rtol=1e-4, atol=1e-4)), (float(loss2), float(ref2))

    print("KERNEL_OK")
</pallas_src>

<mosaic_0001>
module attributes {stable_mosaic.version = 11 : i64} {
  func.func @_lovasz_tail_kernel(%arg0: i32, %arg1: memref<8x1xf32, #tpu.memory_space<vmem>>, %arg2: memref<8x1xf32, #tpu.memory_space<vmem>>, %arg3: memref<8x1xf32, #tpu.memory_space<vmem>>, %arg4: memref<8x128xf32, #tpu.memory_space<vmem>>, %arg5: memref<8x128xbf16, #tpu.memory_space<vmem>>, %arg6: memref<128x128xbf16, #tpu.memory_space<vmem>>, %arg7: memref<1x8x128xf32, #tpu.memory_space<vmem>>) attributes {dimension_semantics = [#tpu.dimension_semantics<parallel>], iteration_bounds = array<i64: 1>, scalar_prefetch = 0 : i64, scratch_operands = 0 : i64, tpu.core_type = #tpu.core_type<tc>, window_params = [{transform_indices = @transform_0, window_bounds = array<i64: 8, 1>}, {transform_indices = @transform_1, window_bounds = array<i64: 8, 1>}, {transform_indices = @transform_2, window_bounds = array<i64: 8, 1>}, {transform_indices = @transform_3, window_bounds = array<i64: 8, 128>}, {transform_indices = @transform_4, window_bounds = array<i64: 8, 128>}, {pipeline_mode = #tpu.pipeline_mode<synchronous>, transform_indices = @transform_5, window_bounds = array<i64: 128, 128>}, {transform_indices = @transform_6, window_bounds = array<i64: 1, 8, 128>}]} {
    %c0 = arith.constant 0 : index
    %c0_0 = arith.constant 0 : index
    %0 = vector.load %arg5[%c0, %c0_0] : memref<8x128xbf16, #tpu.memory_space<vmem>>, vector<8x128xbf16>
    %c0_1 = arith.constant 0 : index
    %c0_2 = arith.constant 0 : index
    %1 = vector.load %arg6[%c0_1, %c0_2] : memref<128x128xbf16, #tpu.memory_space<vmem>>, vector<128x128xbf16>
    %cst = arith.constant dense<0.000000e+00> : vector<8x128xf32>
    %2 = tpu.matmul %0, %1, %cst {dimension_numbers = #tpu.dot_dimension_numbers<[1], [0], [0], [1], [0, 0, 1, 1], [], []>} : vector<8x128xbf16>, vector<128x128xbf16>, vector<8x128xf32> -> vector<8x128xf32>
    %3 = tpu.iota {dimensions = array<i32: 1>} : vector<8x128xi32>
    %4 = arith.sitofp %3 : vector<8x128xi32> to vector<8x128xf32>
    %c0_3 = arith.constant 0 : index
    %c0_4 = arith.constant 0 : index
    %5 = vector.load %arg1[%c0_3, %c0_4] : memref<8x1xf32, #tpu.memory_space<vmem>>, vector<8x1xf32>
    %6 = vector.broadcast %5 : vector<8x1xf32> to vector<8x128xf32>
    %7 = arith.subf %6, %2 : vector<8x128xf32>
    %c0_5 = arith.constant 0 : index
    %c0_6 = arith.constant 0 : index
    %8 = vector.load %arg2[%c0_5, %c0_6] : memref<8x1xf32, #tpu.memory_space<vmem>>, vector<8x1xf32>
    %9 = vector.broadcast %8 : vector<8x1xf32> to vector<8x128xf32>
    %10 = arith.addf %9, %4 : vector<8x128xf32>
    %11 = arith.subf %10, %2 : vector<8x128xf32>
    %12 = arith.divf %7, %11 : vector<8x128xf32>
    %cst_7 = arith.constant 1.000000e+00 : f32
    %13 = vector.broadcast %cst_7 : f32 to vector<8x128xf32>
    %14 = arith.subf %13, %12 : vector<8x128xf32>
    %c1_i32 = arith.constant 1 : i32
    %15 = tpu.dynamic_rotate %14 by %c1_i32 dim 1 : vector<8x128xf32>, i32 -> vector<8x128xf32>
    %c0_i32 = arith.constant 0 : i32
    %16 = vector.broadcast %c0_i32 : i32 to vector<8x128xi32>
    %17 = arith.cmpi eq, %3, %16 : vector<8x128xi32>
    %c0_8 = arith.constant 0 : index
    %c0_9 = arith.constant 0 : index
    %18 = vector.load %arg3[%c0_8, %c0_9] : memref<8x1xf32, #tpu.memory_space<vmem>>, vector<8x1xf32>
    %19 = vector.shape_cast %18 : vector<8x1xf32> to vector<8x1xf32>
    %20 = vector.broadcast %19 : vector<8x1xf32> to vector<8x128xf32>
    %21 = arith.select %17, %20, %15 : vector<8x128xi1>, vector<8x128xf32>
    %22 = arith.subf %14, %21 : vector<8x128xf32>
    %c0_10 = arith.constant 0 : index
    %c0_11 = arith.constant 0 : index
    %23 = vector.load %arg4[%c0_10, %c0_11] : memref<8x128xf32, #tpu.memory_space<vmem>>, vector<8x128xf32>
    %cst_12 = arith.constant 0.000000e+00 : f32
    %24 = vector.broadcast %cst_12 : f32 to vector<8x128xf32>
    %25 = arith.maximumf %23, %24 : vector<8x128xf32>
    %26 = arith.mulf %25, %22 : vector<8x128xf32>
    %c0_13 = arith.constant 0 : index
    %c0_14 = arith.constant 0 : index
    %c0_15 = arith.constant 0 : index
    %27 = vector.load %arg7[%c0_13, %c0_14, %c0_15] : memref<1x8x128xf32, #tpu.memory_space<vmem>>, vector<1x8x128xf32>
    %28 = vector.shape_cast %27 : vector<1x8x128xf32> to vector<8x128xf32>
    %29 = vector.shape_cast %26 : vector<8x128xf32> to vector<1x8x128xf32>
    tpu.vector_store %arg7[%c0_13, %c0_14, %c0_15], %29 {strides = array<i32>} : memref<1x8x128xf32, #tpu.memory_space<vmem>>, vector<1x8x128xf32>,
    return
  }
  func.func @transform_0(%arg0: i32) -> (i32, i32) {
    %c0_i32 = arith.constant 0 : i32
    %c0_i32_0 = arith.constant 0 : i32
    return %arg0, %c0_i32 : i32, i32
  }
  func.func @transform_1(%arg0: i32) -> (i32, i32) {
    %c0_i32 = arith.constant 0 : i32
    %c0_i32_0 = arith.constant 0 : i32
    return %arg0, %c0_i32 : i32, i32
  }
  func.func @transform_2(%arg0: i32) -> (i32, i32) {
    %c0_i32 = arith.constant 0 : i32
    %c0_i32_0 = arith.constant 0 : i32
    return %arg0, %c0_i32 : i32, i32
  }
  func.func @transform_3(%arg0: i32) -> (i32, i32) {
    %c0_i32 = arith.constant 0 : i32
    %c0_i32_0 = arith.constant 0 : i32
    return %arg0, %c0_i32 : i32, i32
  }
  func.func @transform_4(%arg0: i32) -> (i32, i32) {
    %c0_i32 = arith.constant 0 : i32
    %c0_i32_0 = arith.constant 0 : i32
    return %arg0, %c0_i32 : i32, i32
  }
  func.func @transform_5(%arg0: i32) -> (i32, i32) {
    %c0_i32 = arith.constant 0 : i32
    %c0_i32_0 = arith.constant 0 : i32
    %c0_i32_1 = arith.constant 0 : i32
    return %c0_i32, %c0_i32_0 : i32, i32
  }
  func.func @transform_6(%arg0: i32) -> (i32, i32, i32) {
    %c0_i32 = arith.constant 0 : i32
    %c0_i32_0 = arith.constant 0 : i32
    %c0_i32_1 = arith.constant 0 : i32
    return %arg0, %c0_i32, %c0_i32_0 : i32, i32, i32
  }
}

</mosaic_0001>

<bundles_post_ra>
// kernel: neg.3
= control target key start
LH: loop header
LB: loop body
LE: loop exit
PB: predicated region body
PF: predicated region fallthrough
CT: control target
= control target key end

     0   :  { %s24_s0 = inlined_call_operand.vmem [shape: f32[512], index: 0, kind: input, shape index: {}]   ;;  %s25_s1 = inlined_call_operand.vmem [shape: f32[512], index: 1, kind: output, shape index: {}]  }
   0x1   :  { %v2_v0 = vld [vmem:[%s24_s0] sm:$0xf] }
   0x2   :  { %v5_v1 = vxor.u32 2147483648, %v2_v0 }
   0x4   :  { %7 = vst [vmem:[%s25_s1] sm:$0xf] %v5_v1 }

// kernel: lovasz_hinge_loss.1
= control target key start
LH: loop header
LB: loop body
LE: loop exit
PB: predicated region body
PF: predicated region fallthrough
CT: control target
= control target key end

     0   :  { %v222_v0 = vmov 0.0   ;;  %vm223_vm0 = vmmov 0   ;;  %v224_v2 = vmov 0   ;;  %v129_v14 = vlaneseq  ;;  %s303_s5 = inlined_call_operand.vmem [shape: bf16[128,128], index: 5, kind: input, shape index: {}]   ;;  %s304_s1 = inlined_call_operand.vmem [shape: f32[8,1], index: 1, kind: input, shape index: {}]   ;;  %s305_s0 = inlined_call_operand.vmem [shape: f32[8,1], index: 0, kind: input, shape index: {}]   ;;  %s306_s4 = inlined_call_operand.vmem [shape: bf16[8,128], index: 4, kind: input, shape index: {}]   ;;  %s307_s2 = inlined_call_operand.vmem [shape: f32[8,1], index: 2, kind: input, shape index: {}]   ;;  %s308_s3 = inlined_call_operand.vmem [shape: f32[8,128], index: 3, kind: input, shape index: {}]   ;;  %s309_s6 = inlined_call_operand.vmem [shape: f32[1,8,128], index: 6, kind: output, shape index: {}]  }
   0x1   :  { %186 = vmatprep.subr.bf16.mxu0 %v222_v0  ;;  %v212_v1 = vld [vmem:[%s303_s5 + $0x38] sm:$0xff]   ;;  %202 = vmatprep.mubr.msk.bf16.mxu0 %vm223_vm0, %v222_v0  ;;  %v213_v3 = vld [vmem:[%s303_s5 + $0x30] sm:$0xff]   ;;  %v214_v4 = vld [vmem:[%s303_s5 + $0x28] sm:$0xff]  }
   0x2   :  { %210 = vset.pattern.permute.xlu0 %v224_v2  ;;  %211 = vset.pattern.permute.xlu1 %v224_v2  ;;  %v139_v5 = vld [vmem:[%s304_s1] sm:$0xff]  ;;  %v216_v8 = vld [vmem:[%s303_s5 + $0x18] sm:$0xff]   ;;  %v217_v9 = vld [vmem:[%s303_s5 + $0x10] sm:$0xff]   ;;  %v130_v15 = vand.u32 127, %v129_v14 }
   0x3   :  { %187 = vmatpush3.bf16.msra.mxu0 %v212_v1  ;;  %142 = vperm.xlu0 %210, %v139_v5   ;;  %v215_v6 = vld [vmem:[%s303_s5 + $0x20] sm:$0xff]   ;;  %v218_v10 = vld [vmem:[%s303_s5 + $0x8] sm:$0xff]  }
   0x4   :  { %188 = vmatprep.subr.bf16.mxu0 %v222_v0  ;;  %v132_v7 = vld [vmem:[%s305_s0] sm:$0xff]  ;;  %v131_v16 = vcvt.s32.f32 %v130_v15  ;;  %vm152_vm1 = vcmp.eq.s32.totalorder %v130_v15, 0 }
   0x5   :  { %v219_v11 = vld [vmem:[%s303_s5] sm:$0xff]  }
   0x6   :  { %v24_v12 = vld [vmem:[%s306_s4] sm:$0xf]  ;;  %s225_s4 = smov 1  }
   0x7   :  { %189 = vmatpush3.bf16.msra.mxu0 %v213_v3  ;;  %135 = vperm.xlu0 %210, %v132_v7   ;;  %v153_v13 = vld [vmem:[%s307_s2] sm:$0xff] }
   0x8   :  { %190 = vmatprep.subr.bf16.mxu0 %v222_v0  ;;  %156 = vperm.xlu1 %211, %v153_v13   ;;  %v161_v30 = vld [vmem:[%s308_s3] sm:$0xff] }
   0x9   :  { %v162_v31 = vmax.f32 %v161_v30, 0.0 }
   0xb   :  { %191 = vmatpush3.bf16.msra.mxu0 %v214_v4 }
   0xc   :  { %192 = vmatprep.subr.bf16.mxu0 %v222_v0 }
   0xf   :  { %193 = vmatpush3.bf16.msra.mxu0 %v215_v6 }
  0x10   :  { %194 = vmatprep.subr.bf16.mxu0 %v222_v0 }
  0x13   :  { %195 = vmatpush3.bf16.msra.mxu0 %v216_v8 }
  0x14   :  { %196 = vmatprep.subr.bf16.mxu0 %v222_v0 }
  0x17   :  { %197 = vmatpush3.bf16.msra.mxu0 %v217_v9 }
  0x18   :  { %198 = vmatprep.subr.bf16.mxu0 %v222_v0 }
  0x1b   :  { %199 = vmatpush3.bf16.msra.mxu0 %v218_v10 }
  0x1c   :  { %200 = vmatprep.subr.bf16.mxu0 %v222_v0 }
  0x1f   :  { %201 = vmatpush3.bf16.msra.mxu0 %v219_v11 }
  0x22   :  { %203 = vmatmul.mubr.bf16.vlgmr.msra.gmra.mxu0 %v24_v12 }
  0x7e   :  { %v143_v17 = vpop.permute.xlu0 %142 }
  0x7f   :  { %v145_v18 = vadd.f32 %v143_v17, %v131_v16 }
  0x82   :  { %v136_v24 = vpop.permute.xlu0 %135 }
  0x83   :  { %v157_v29 = vpop.permute.xlu1 %156 }
  0xe2   :  { %v123_v19 = vpop.f32.mrf.mxu0 }
  0xe3   :  { %v146_v20 = vsub.f32 %v145_v18, %v123_v19  ;;  %v138_v25 = vsub.f32 %v136_v24, %v123_v19 }
  0xe4   :  { %v204_v21 = vpop.f32.mrf.mxu0 }
  0xe5   :  { %220 = vrcp.f32 %v146_v20 }
  0xe6   :  { %v126_v22 = vpop.f32.mrf.mxu0 }
  0xe8   :  { %v205_v23 = vpop.f32.mrf.mxu0 }
  0xf2   :  { %v221_v26 = vpop.eup %220 }
  0xf3   :  { %v148_v27 = vmul.f32 %v221_v26, %v138_v25 }
  0xf5   :  { %v149_v28 = vsub.f32 1.0, %v148_v27 }
  0xf7   :  { %150 = vrot.lane.b32.xlu1 %v149_v28, %s225_s4 }
 0x169   :  { %v151_v32 = vpop.permute.xlu1 %150 }
 0x16a   :  { %v159_v33 = vsel %vm152_vm1, %v157_v29, %v151_v32 }
 0x16b   :  { %v160_v34 = vsub.f32 %v149_v28, %v159_v33 }
 0x16d   :  { %v163_v35 = vmul.f32 %v162_v31, %v160_v34 }
 0x16f   :  { %164 = vst [vmem:[%s309_s6] sm:$0xff] %v163_v35 }

</bundles_post_ra>
